<compile_context>
chip_gen: v6e
topology: v6e:2x2x1
jax: 0.10.0
libtpu: 0.0.40
codegen_flags: <defaults>
</compile_context>

<pallas_src>
import functools

import jax
import jax.numpy as jnp
from jax.experimental import pallas as pl
from jax.experimental.pallas import tpu as pltpu


def _make_mlp_kernel(num_hidden_layers, droprate, activation, training,
                     rows_per_core, hidden_dim):
    use_dropout = bool(training) and droprate > 0.0
    inv_keep = 1.0 / (1.0 - droprate) if droprate < 1.0 else 0.0
    thresh = min(int(droprate * 4294967296.0), 4294967295)  # droprate * 2^32

    def act(h):
        if activation == "tanh":
            return jnp.tanh(h)
        if activation == "relu":
            return jnp.maximum(h, 0.0)
        return h

    def kernel(seed_ref, x_ref, w_in_ref, b_ref, w_hid_ref, w_fin_ref, b_fin_ref,
               out_ref):
        g = pl.program_id(0)  # core / grid-slice index

        if use_dropout:
            rows, cols = rows_per_core, hidden_dim
            # Hoisted dropout counter base: computed ONCE, reused by every layer.
            r = jax.lax.broadcasted_iota(jnp.int32, (rows, cols), 0)
            c = jax.lax.broadcasted_iota(jnp.int32, (rows, cols), 1)
            # global row = sample * B + batch_row  -> encodes the MC-sample index,
            # so each sample gets an independent mask (same semantics as S separate
            # stochastic forward passes).
            global_row = (r + g * rows).astype(jnp.uint32)
            seed_mix = seed_ref[0].astype(jnp.uint32) * jnp.uint32(0x9E3779B1)
            ctr0 = seed_mix + global_row * jnp.uint32(cols) + c.astype(jnp.uint32)
        else:
            ctr0 = None

        def dropout(h, layer_idx):
            if not use_dropout:
                return h
            # Cheap 2-round multiply-xorshift mixer (pure VPU int ops).
            salt = jnp.uint32((layer_idx * 0x85EBCA77) & 0xFFFFFFFF)
            v = ctr0 ^ salt
            v = v * jnp.uint32(0x7FEB352D)
            v = v ^ (v >> 16)
            v = v * jnp.uint32(0x846CA68B)
            v = v ^ (v >> 15)
            keep = v >= jnp.uint32(thresh)              # P(keep) = 1 - droprate
            return jnp.where(keep, h * inv_keep, 0.0)   # inverted dropout, f32 math

        # Input layer Linear(1, H): K=1 -> VPU broadcast multiply-add (no MXU).
        h = act(x_ref[...] * w_in_ref[...] + b_ref[0])                  # (rows, H) f32

        # Hidden layers: dropout -> Linear(H, H) on the MXU -> activation.
        for i in range(num_hidden_layers - 1):
            h = dropout(h, i + 1)
            w = w_hid_ref[i]                                            # (H, H)
            h = act(jnp.dot(h.astype(w.dtype), w,
                            preferred_element_type=jnp.float32) + b_ref[i + 1])

        # Output layer Linear(H, 1): compute as w_fin @ h^T so the result is already
        # a lane-dense (1, rows) row -> one unmasked store (no (rows,1) column store).
        h = dropout(h, num_hidden_layers)
        y = jax.lax.dot_general(w_fin_ref[...], h,
                                dimension_numbers=(((1,), (1,)), ((), ())),
                                preferred_element_type=jnp.float32)     # (1, rows)
        out_ref[0] = y + b_fin_ref[...]

    return kernel


@functools.partial(
    jax.jit,
    static_argnames=("hidden_layers", "droprate", "activation", "training",
                     "num_samples", "num_cores"))
def mlp2_forward(x, seed, packed_params, *, hidden_layers, droprate=0.2,
                 activation="tanh", training=False, num_samples=1, num_cores=1):
    """Fused MLP2 forward.  Returns (num_samples, B, 1).

    All MC samples are folded into the matmul M dimension (M = num_samples * B);
    the grid has `num_cores` steps (use 2 on v7x, 1 on v5e/v6e).
    """
    w_in, b_stack, w_hid, w_fin, b_fin = packed_params
    B = x.shape[0]
    L = len(hidden_layers)
    H = hidden_layers[0]
    S = int(num_samples)
    M = S * B
    assert L >= 2, "kernel expects at least two hidden layers (as in the PyTorch model)"
    assert M % num_cores == 0, "num_samples * batch must divide num_cores"
    rows = M // num_cores
    assert rows % 8 == 0, "rows per grid step must be sublane (8) aligned"

    # Fold the MC-sample axis into rows: (S*B, 1), rows ordered sample-major.
    x_rows = jnp.tile(x, (S, 1)) if S > 1 else x

    kernel = _make_mlp_kernel(L, droprate, activation, training, rows, H)

    smem = pltpu.MemorySpace.SMEM
    in_specs = [
        pl.BlockSpec(memory_space=smem),                       # seed (SMEM scalar)
        pl.BlockSpec((rows, 1), lambda g: (g, 0)),             # folded input rows
        pl.BlockSpec((1, H), lambda g: (0, 0)),                # input-layer weight row
        pl.BlockSpec((L, 1, H), lambda g: (0, 0, 0)),          # all hidden/input biases
        pl.BlockSpec((L - 1, H, H), lambda g: (0, 0, 0)),      # packed hidden weights
        pl.BlockSpec((1, H), lambda g: (0, 0)),                # final-layer weight row
        pl.BlockSpec((1, 1), lambda g: (0, 0)),                # final-layer bias
    ]
    # Lane-dense output: one (1, rows) row per grid step.
    out_specs = pl.BlockSpec((1, 1, rows), lambda g: (g, 0, 0))

    out = pl.pallas_call(
        kernel,
        out_shape=jax.ShapeDtypeStruct((num_cores, 1, rows), jnp.float32),
        grid=(num_cores,),
        in_specs=in_specs,
        out_specs=out_specs,
        compiler_params=pltpu.CompilerParams(
            dimension_semantics=("parallel",)),                # 2 TCs on v7x
    )(seed, x_rows, w_in, b_stack, w_hid, w_fin, b_fin)

    return out.reshape(S, B, 1)


def init_mlp2_params(key, hidden_layers):
    """PyTorch nn.Linear-style init: W ~ U(+/-1/sqrt(fan_in)), shape (out,in); b (out,)."""
    dims = [1] + list(hidden_layers) + [1]
    layers = []
    for i in range(len(dims) - 1):
        fan_in, fan_out = dims[i], dims[i + 1]
        key, kw, kb = jax.random.split(key, 3)
        bound = 1.0 / (fan_in ** 0.5)
        W = jax.random.uniform(kw, (fan_out, fan_in), jnp.float32, -bound, bound)
        b = jax.random.uniform(kb, (fan_out,), jnp.float32, -bound, bound)
        layers.append((W, b))
    return layers


def pack_params(layers, hidden_layers, matmul_dtype=jnp.bfloat16):
    """Pack PyTorch-layout (W (out,in), b (out,)) params into the kernel's fused layout.

    Hidden weights are cast to `matmul_dtype` HERE (host side) so no per-call convert
    op runs inside jit and the VMEM weight DMA is halved for bf16.
    """
    L = len(hidden_layers)
    H = hidden_layers[0]
    assert all(h == H for h in hidden_layers), "kernel packs equal-width hidden layers"
    w_in = layers[0][0].T.astype(jnp.float32)                               # (1, H)
    b_stack = jnp.stack([layers[i][1].reshape(1, H) for i in range(L)], 0)  # (L, 1, H)
    w_hid = jnp.stack([layers[i][0].T for i in range(1, L)], 0).astype(matmul_dtype)
    w_fin = layers[L][0].astype(jnp.float32)                                # (1, H)
    b_fin = layers[L][1].reshape(1, 1).astype(jnp.float32)                  # (1, 1)
    return (w_in, b_stack, w_hid, w_fin, b_fin)


def mlp2_reference(x, layers, activation="tanh"):
    """Pure-JAX reference of MLP2.forward in eval mode (dropout = identity)."""
    a = jnp.tanh if activation == "tanh" else (lambda v: jnp.maximum(v, 0.0))
    h = x
    n = len(layers)
    for i, (W, b) in enumerate(layers):
        h = h @ W.T + b
        if i < n - 1:
            h = a(h)
    return h


if __name__ == "__main__":
    hidden_layers = (128, 128, 128, 128, 128)   # lane-aligned hidden width
    B = 8                                       # sublane-aligned batch
    S = 16                                      # MC-dropout samples, folded into M=S*B

    key = jax.random.PRNGKey(0)
    key, kx = jax.random.split(key)
    x = jax.random.normal(kx, (B, 1), jnp.float32)
    layers = init_mlp2_params(key, hidden_layers)
    packed_f32 = pack_params(layers, hidden_layers, matmul_dtype=jnp.float32)
    packed_bf16 = pack_params(layers, hidden_layers, matmul_dtype=jnp.bfloat16)
    seed = jnp.array([1234], dtype=jnp.int32)

    # Eval mode (model.eval(): dropout identity); f32 matmuls, checked vs pure-JAX ref.
    y_eval = mlp2_forward(x, seed, packed_f32, hidden_layers=hidden_layers, droprate=0.2,
                          activation="tanh", training=False, num_samples=1, num_cores=1)
    jax.block_until_ready(y_eval)
    y_ref = mlp2_reference(x, layers, activation="tanh")
    assert y_eval.shape == (1, B, 1)
    assert jnp.allclose(y_eval[0], y_ref, atol=1e-2, rtol=1e-2), "eval mismatch vs reference"

    # MC-dropout: S stochastic forward passes folded into ONE kernel launch with
    # M = S*B = 128 matmul rows, 2 grid steps (one per TensorCore on v7x).  Hidden
    # matmuls in bf16 (f32 accumulate); per-sample masks derive from the row index.
    y_mc = mlp2_forward(x, seed, packed_bf16, hidden_layers=hidden_layers, droprate=0.2,
                        activation="tanh", training=True, num_samples=S, num_cores=2)
    jax.block_until_ready(y_mc)
    assert y_mc.shape == (S, B, 1)
    assert bool(jnp.all(jnp.isfinite(y_mc)))
    assert float(jnp.std(y_mc)) > 0.0, "MC-dropout samples should differ"

    print("KERNEL_OK")
</pallas_src>

<mosaic_0001>
module attributes {stable_mosaic.version = 11 : i64} {
  func.func @kernel(%arg0: i32, %arg1: memref<1xi32, #tpu.memory_space<smem>>, %arg2: memref<8x1xf32, #tpu.memory_space<vmem>>, %arg3: memref<1x128xf32, #tpu.memory_space<vmem>>, %arg4: memref<5x1x128xf32, #tpu.memory_space<vmem>>, %arg5: memref<4x128x128xf32, #tpu.memory_space<vmem>>, %arg6: memref<1x128xf32, #tpu.memory_space<vmem>>, %arg7: memref<1x1xf32, #tpu.memory_space<vmem>>, %arg8: memref<1x1x8xf32, #tpu.memory_space<vmem>>) attributes {dimension_semantics = [#tpu.dimension_semantics<parallel>], iteration_bounds = array<i64: 1>, scalar_prefetch = 0 : i64, scratch_operands = 0 : i64, tpu.core_type = #tpu.core_type<tc>, window_params = [{transform_indices = @transform_0, window_bounds = array<i64: 1>}, {transform_indices = @transform_1, window_bounds = array<i64: 8, 1>}, {pipeline_mode = #tpu.pipeline_mode<synchronous>, transform_indices = @transform_2, window_bounds = array<i64: 1, 128>}, {pipeline_mode = #tpu.pipeline_mode<synchronous>, transform_indices = @transform_3, window_bounds = array<i64: 5, 1, 128>}, {pipeline_mode = #tpu.pipeline_mode<synchronous>, transform_indices = @transform_4, window_bounds = array<i64: 4, 128, 128>}, {pipeline_mode = #tpu.pipeline_mode<synchronous>, transform_indices = @transform_5, window_bounds = array<i64: 1, 128>}, {pipeline_mode = #tpu.pipeline_mode<synchronous>, transform_indices = @transform_6, window_bounds = array<i64: 1, 1>}, {transform_indices = @transform_7, window_bounds = array<i64: 1, 1, 8>}]} {
    %c0 = arith.constant 0 : index
    %c0_0 = arith.constant 0 : index
    %0 = vector.load %arg2[%c0, %c0_0] : memref<8x1xf32, #tpu.memory_space<vmem>>, vector<8x1xf32>
    %c0_1 = arith.constant 0 : index
    %c0_2 = arith.constant 0 : index
    %1 = vector.load %arg3[%c0_1, %c0_2] : memref<1x128xf32, #tpu.memory_space<vmem>>, vector<1x128xf32>
    %2 = vector.broadcast %0 : vector<8x1xf32> to vector<8x128xf32>
    %3 = vector.broadcast %1 : vector<1x128xf32> to vector<8x128xf32>
    %4 = arith.mulf %2, %3 : vector<8x128xf32>
    %c0_3 = arith.constant 0 : index
    %c0_4 = arith.constant 0 : index
    %c0_5 = arith.constant 0 : index
    %5 = vector.load %arg4[%c0_3, %c0_4, %c0_5] : memref<5x1x128xf32, #tpu.memory_space<vmem>>, vector<1x1x128xf32>
    %6 = vector.shape_cast %5 : vector<1x1x128xf32> to vector<1x128xf32>
    %7 = vector.broadcast %6 : vector<1x128xf32> to vector<8x128xf32>
    %8 = arith.addf %4, %7 : vector<8x128xf32>
    %9 = math.tanh %8 : vector<8x128xf32>
    %c0_6 = arith.constant 0 : index
    %c0_7 = arith.constant 0 : index
    %c0_8 = arith.constant 0 : index
    %10 = vector.load %arg5[%c0_6, %c0_7, %c0_8] : memref<4x128x128xf32, #tpu.memory_space<vmem>>, vector<1x128x128xf32>
    %11 = vector.shape_cast %10 : vector<1x128x128xf32> to vector<128x128xf32>
    %cst = arith.constant dense<0.000000e+00> : vector<8x128xf32>
    %12 = tpu.matmul %9, %11, %cst {dimension_numbers = #tpu.dot_dimension_numbers<[1], [0], [0], [1], [0, 0, 1, 1], [], []>} : vector<8x128xf32>, vector<128x128xf32>, vector<8x128xf32> -> vector<8x128xf32>
    %c1 = arith.constant 1 : index
    %c0_9 = arith.constant 0 : index
    %c0_10 = arith.constant 0 : index
    %13 = vector.load %arg4[%c1, %c0_9, %c0_10] : memref<5x1x128xf32, #tpu.memory_space<vmem>>, vector<1x1x128xf32>
    %14 = vector.shape_cast %13 : vector<1x1x128xf32> to vector<1x128xf32>
    %15 = vector.broadcast %14 : vector<1x128xf32> to vector<8x128xf32>
    %16 = arith.addf %12, %15 : vector<8x128xf32>
    %17 = math.tanh %16 : vector<8x128xf32>
    %c1_11 = arith.constant 1 : index
    %c0_12 = arith.constant 0 : index
    %c0_13 = arith.constant 0 : index
    %18 = vector.load %arg5[%c1_11, %c0_12, %c0_13] : memref<4x128x128xf32, #tpu.memory_space<vmem>>, vector<1x128x128xf32>
    %19 = vector.shape_cast %18 : vector<1x128x128xf32> to vector<128x128xf32>
    %cst_14 = arith.constant dense<0.000000e+00> : vector<8x128xf32>
    %20 = tpu.matmul %17, %19, %cst_14 {dimension_numbers = #tpu.dot_dimension_numbers<[1], [0], [0], [1], [0, 0, 1, 1], [], []>} : vector<8x128xf32>, vector<128x128xf32>, vector<8x128xf32> -> vector<8x128xf32>
    %c2 = arith.constant 2 : index
    %c0_15 = arith.constant 0 : index
    %c0_16 = arith.constant 0 : index
    %21 = vector.load %arg4[%c2, %c0_15, %c0_16] : memref<5x1x128xf32, #tpu.memory_space<vmem>>, vector<1x1x128xf32>
    %22 = vector.shape_cast %21 : vector<1x1x128xf32> to vector<1x128xf32>
    %23 = vector.broadcast %22 : vector<1x128xf32> to vector<8x128xf32>
    %24 = arith.addf %20, %23 : vector<8x128xf32>
    %25 = math.tanh %24 : vector<8x128xf32>
    %c2_17 = arith.constant 2 : index
    %c0_18 = arith.constant 0 : index
    %c0_19 = arith.constant 0 : index
    %26 = vector.load %arg5[%c2_17, %c0_18, %c0_19] : memref<4x128x128xf32, #tpu.memory_space<vmem>>, vector<1x128x128xf32>
    %27 = vector.shape_cast %26 : vector<1x128x128xf32> to vector<128x128xf32>
    %cst_20 = arith.constant dense<0.000000e+00> : vector<8x128xf32>
    %28 = tpu.matmul %25, %27, %cst_20 {dimension_numbers = #tpu.dot_dimension_numbers<[1], [0], [0], [1], [0, 0, 1, 1], [], []>} : vector<8x128xf32>, vector<128x128xf32>, vector<8x128xf32> -> vector<8x128xf32>
    %c3 = arith.constant 3 : index
    %c0_21 = arith.constant 0 : index
    %c0_22 = arith.constant 0 : index
    %29 = vector.load %arg4[%c3, %c0_21, %c0_22] : memref<5x1x128xf32, #tpu.memory_space<vmem>>, vector<1x1x128xf32>
    %30 = vector.shape_cast %29 : vector<1x1x128xf32> to vector<1x128xf32>
    %31 = vector.broadcast %30 : vector<1x128xf32> to vector<8x128xf32>
    %32 = arith.addf %28, %31 : vector<8x128xf32>
    %33 = math.tanh %32 : vector<8x128xf32>
    %c3_23 = arith.constant 3 : index
    %c0_24 = arith.constant 0 : index
    %c0_25 = arith.constant 0 : index
    %34 = vector.load %arg5[%c3_23, %c0_24, %c0_25] : memref<4x128x128xf32, #tpu.memory_space<vmem>>, vector<1x128x128xf32>
    %35 = vector.shape_cast %34 : vector<1x128x128xf32> to vector<128x128xf32>
    %cst_26 = arith.constant dense<0.000000e+00> : vector<8x128xf32>
    %36 = tpu.matmul %33, %35, %cst_26 {dimension_numbers = #tpu.dot_dimension_numbers<[1], [0], [0], [1], [0, 0, 1, 1], [], []>} : vector<8x128xf32>, vector<128x128xf32>, vector<8x128xf32> -> vector<8x128xf32>
    %c4 = arith.constant 4 : index
    %c0_27 = arith.constant 0 : index
    %c0_28 = arith.constant 0 : index
    %37 = vector.load %arg4[%c4, %c0_27, %c0_28] : memref<5x1x128xf32, #tpu.memory_space<vmem>>, vector<1x1x128xf32>
    %38 = vector.shape_cast %37 : vector<1x1x128xf32> to vector<1x128xf32>
    %39 = vector.broadcast %38 : vector<1x128xf32> to vector<8x128xf32>
    %40 = arith.addf %36, %39 : vector<8x128xf32>
    %41 = math.tanh %40 : vector<8x128xf32>
    %c0_29 = arith.constant 0 : index
    %c0_30 = arith.constant 0 : index
    %42 = vector.load %arg6[%c0_29, %c0_30] : memref<1x128xf32, #tpu.memory_space<vmem>>, vector<1x128xf32>
    %cst_31 = arith.constant dense<0.000000e+00> : vector<1x8xf32>
    %43 = tpu.matmul %42, %41, %cst_31 {dimension_numbers = #tpu.dot_dimension_numbers<[1], [1], [0], [0], [0, 0, 1, 0], [], []>} : vector<1x128xf32>, vector<8x128xf32>, vector<1x8xf32> -> vector<1x8xf32>
    %c0_32 = arith.constant 0 : index
    %c0_33 = arith.constant 0 : index
    %44 = vector.load %arg7[%c0_32, %c0_33] : memref<1x1xf32, #tpu.memory_space<vmem>>, vector<1x1xf32>
    %45 = vector.broadcast %44 : vector<1x1xf32> to vector<1x8xf32>
    %46 = arith.addf %43, %45 : vector<1x8xf32>
    %c0_34 = arith.constant 0 : index
    %c0_35 = arith.constant 0 : index
    %c0_36 = arith.constant 0 : index
    %47 = vector.load %arg8[%c0_34, %c0_35, %c0_36] : memref<1x1x8xf32, #tpu.memory_space<vmem>>, vector<1x1x8xf32>
    %48 = vector.shape_cast %47 : vector<1x1x8xf32> to vector<1x8xf32>
    %49 = vector.shape_cast %46 : vector<1x8xf32> to vector<1x1x8xf32>
    tpu.vector_store %arg8[%c0_34, %c0_35, %c0_36], %49 {strides = array<i32>} : memref<1x1x8xf32, #tpu.memory_space<vmem>>, vector<1x1x8xf32>,
    return
  }
  func.func @transform_0(%arg0: i32) -> i32 {
    %c0_i32 = arith.constant 0 : i32
    %c0_i32_0 = arith.constant 0 : i32
    return %c0_i32 : i32
  }
  func.func @transform_1(%arg0: i32) -> (i32, i32) {
    %c0_i32 = arith.constant 0 : i32
    %c0_i32_0 = arith.constant 0 : i32
    return %arg0, %c0_i32 : i32, i32
  }
  func.func @transform_2(%arg0: i32) -> (i32, i32) {
    %c0_i32 = arith.constant 0 : i32
    %c0_i32_0 = arith.constant 0 : i32
    %c0_i32_1 = arith.constant 0 : i32
    return %c0_i32, %c0_i32_0 : i32, i32
  }
  func.func @transform_3(%arg0: i32) -> (i32, i32, i32) {
    %c0_i32 = arith.constant 0 : i32
    %c0_i32_0 = arith.constant 0 : i32
    %c0_i32_1 = arith.constant 0 : i32
    %c0_i32_2 = arith.constant 0 : i32
    return %c0_i32, %c0_i32_0, %c0_i32_1 : i32, i32, i32
  }
  func.func @transform_4(%arg0: i32) -> (i32, i32, i32) {
    %c0_i32 = arith.constant 0 : i32
    %c0_i32_0 = arith.constant 0 : i32
    %c0_i32_1 = arith.constant 0 : i32
    %c0_i32_2 = arith.constant 0 : i32
    return %c0_i32, %c0_i32_0, %c0_i32_1 : i32, i32, i32
  }
  func.func @transform_5(%arg0: i32) -> (i32, i32) {
    %c0_i32 = arith.constant 0 : i32
    %c0_i32_0 = arith.constant 0 : i32
    %c0_i32_1 = arith.constant 0 : i32
    return %c0_i32, %c0_i32_0 : i32, i32
  }
  func.func @transform_6(%arg0: i32) -> (i32, i32) {
    %c0_i32 = arith.constant 0 : i32
    %c0_i32_0 = arith.constant 0 : i32
    %c0_i32_1 = arith.constant 0 : i32
    return %c0_i32, %c0_i32_0 : i32, i32
  }
  func.func @transform_7(%arg0: i32) -> (i32, i32, i32) {
    %c0_i32 = arith.constant 0 : i32
    %c0_i32_0 = arith.constant 0 : i32
    %c0_i32_1 = arith.constant 0 : i32
    return %arg0, %c0_i32, %c0_i32_0 : i32, i32, i32
  }
}

</mosaic_0001>

<bundles_post_ra>
// kernel: mlp2_forward.1
= control target key start
LH: loop header
LB: loop body
LE: loop exit
PB: predicated region body
PF: predicated region fallthrough
CT: control target
= control target key end

     0   :  { %s990_s0 = inlined_call_operand.<no memory space> [shape: s32[1], index: 0, kind: input, shape index: {}]   ;;  %s991_s1 = inlined_call_operand.vmem [shape: f32[8,1], index: 1, kind: input, shape index: {}]   ;;  %s992_s2 = inlined_call_operand.vmem [shape: f32[1,128], index: 2, kind: input, shape index: {}]   ;;  %s993_s3 = inlined_call_operand.vmem [shape: f32[5,1,128], index: 3, kind: input, shape index: {}]   ;;  %s994_s4 = inlined_call_operand.hbm [shape: f32[4,128,128], index: 4, kind: input, shape index: {}]   ;;  %s995_s5 = inlined_call_operand.vmem [shape: f32[1,128], index: 5, kind: input, shape index: {}]   ;;  %s996_s6 = inlined_call_operand.<no memory space> [shape: f32[1,1], index: 6, kind: input, shape index: {}]   ;;  %s997_s7 = inlined_call_operand.hbm [shape: f32[1,1,8], index: 7, kind: output, shape index: {}]  }
   0x1   :  { %v13_v0 = vstv %s996_s6 }
   0x2   :  { %14 = vst [vmem:[#allocation3] sm:$0x1] %v13_v0 }
   0x3   :  { %15 = vsyncpa [#allocation5], 0 }
   0x4   :  { %16 = vsyncpa [#allocation6], 0  ;;  %s835_s25 = smov [#allocation4]  }
   0x5   :  { %s30_s26 = sshll.u32 %s835_s25, 4  ;;  %s31_s26 = int_to_ptr.vmem [resolvable:$true] %s30_s26 }
   0x6   :  { %s799_s27 = scalar_lea.vmem %s31_s26, 8192  ;;  %p804_p1 = scmp.lt.s32.totalorder %s31_s26, %s31_s26 }
   0x7   :  { %p800_p0 = scmp.ne.s32.totalorder %s31_s26, %s799_s27  ;;  %p805_p2 = scmp.lt.s32.totalorder %s799_s27, %s799_s27 }
   0x9   :  { %p806_p3 = por %p805_p2, %p804_p1 }
   0xb   :  { %p807_p4 = pnand %p806_p3, %p800_p0 }
   0xd   :  { %810 = shalt.err (!%p807_p4)
}
   0xe   :  { %s836_s28 = smov 128   ;;  %s837_s29 = smov 8  }
   0xf   :  { %36 = dma.hbm_to_vmem [thread:$0]  %s994_s4, 8192, %s31_s26, [#allocation5], %s836_s28, %s836_s28, %s837_s29  }
  0x10   :  { %831 = dma.done.wait [#allocation5], 8192  }
  0x11   :  { %832 = vsyncadd [#allocation5], 4294959104  ;;  %v838_v1 = vmov 0   ;;  %v839_v2 = vmov 0.0   ;;  %v44_v3 = vld [vmem:[%s991_s1] sm:$0xff]  ;;  %v81_v5 = vld [vmem:[#allocation4 + $0x70] sm:$0xff] }
  0x12   :  { %780 = vset.pattern.permute.xlu0 %v838_v1  ;;  %628 = vmatprep.subr.mxu0 %v839_v2  ;;  %v82_v4 = vld [vmem:[#allocation4 + $0x78] sm:$0xff]  ;;  %v80_v7 = vld [vmem:[#allocation4 + $0x68] sm:$0xff]  ;;  %vm840_vm0 = vmmov 0   ;;  %v79_v8 = vld [vmem:[#allocation4 + $0x60] sm:$0xff]  ;;  %s841_s21 = smov [#allocation7]   ;;  %vm531_vm1 = vcmask 57344  }
  0x13   :  { %663 = vmatprep.subr.mxu1 %v839_v2  ;;  %48 = vperm.xlu0 %780, %v44_v3   ;;  %v451_v6 = vld [vmem:[#allocation3] sm:$0x1]  ;;  %v77_v10 = vld [vmem:[#allocation4 + $0x50] sm:$0xff]  ;;  %v76_v11 = vld [vmem:[#allocation4 + $0x48] sm:$0xff]  ;;  %s539_s22 = sshll.u32 %s841_s21, 4  ;;  %s540_s22 = int_to_ptr.vmem [resolvable:$true] %s539_s22 }
  0x14   :  { %629 = vmatpush3.msra.mxu0 %v82_v4  ;;  %660 = vmatprep.mubr.msk.f32.mxu0 %vm840_vm0, %v839_v2  ;;  %v78_v9 = vld [vmem:[#allocation4 + $0x58] sm:$0xff]  ;;  %v75_v12 = vld [vmem:[#allocation4 + $0x40] sm:$0xff]  ;;  %v177_v15 = vld [vmem:[#allocation4 + $0xf0] sm:$0xff]  ;;  %s815_s0 = scalar_lea.vmem %s540_s22, 32  ;;  %p816_p6 = scmp.lt.s32.totalorder %s540_s22, %s540_s22 }
  0x15   :  { %630 = vmatprep.subr.mxu0 %v839_v2  ;;  %695 = vmatprep.mubr.msk.f32.mxu1 %vm840_vm0, %v839_v2  ;;  %v74_v13 = vld [vmem:[#allocation4 + $0x38] sm:$0xff]  ;;  %v73_v16 = vld [vmem:[#allocation4 + $0x30] sm:$0xff]  ;;  %v176_v17 = vld [vmem:[#allocation4 + $0xe8] sm:$0xff] }
  0x16   :  { %631 = vmatpush3.msra.mxu0 %v81_v5  ;;  %v178_v14 = vld [vmem:[#allocation4 + $0xf8] sm:$0xff]  ;;  %v72_v18 = vld [vmem:[#allocation4 + $0x28] sm:$0xff]  ;;  %v175_v19 = vld [vmem:[#allocation4 + $0xe0] sm:$0xff] }
  0x17   :  { %632 = vmatprep.subr.mxu0 %v839_v2  ;;  %454 = vperm.xlu0 %780, %v451_v6   ;;  %v71_v20 = vld [vmem:[#allocation4 + $0x20] sm:$0xff]  ;;  %v174_v21 = vld [vmem:[#allocation4 + $0xd8] sm:$0xff]  ;;  %v173_v23 = vld [vmem:[#allocation4 + $0xd0] sm:$0xff] }
  0x18   :  { %633 = vmatpush3.msra.mxu0 %v80_v7  ;;  %664 = vmatpush3.msra.mxu1 %v178_v14  ;;  %v70_v22 = vld [vmem:[#allocation4 + $0x18] sm:$0xff]  ;;  %v69_v24 = vld [vmem:[#allocation4 + $0x10] sm:$0xff]  ;;  %v172_v25 = vld [vmem:[#allocation4 + $0xc8] sm:$0xff] }
  0x19   :  { %634 = vmatprep.subr.mxu0 %v839_v2  ;;  %665 = vmatprep.subr.mxu1 %v839_v2  ;;  %v68_v26 = vld [vmem:[#allocation4 + $0x8] sm:$0xff]  ;;  %v67_v27 = vld [vmem:[#allocation4] sm:$0xff]  ;;  %v548_v28 = vld [vmem:[%s992_s2] ss:$0 sm:$0xff] }
  0x1a   :  { %635 = vmatpush3.msra.mxu0 %v79_v8  ;;  %666 = vmatpush3.msra.mxu1 %v177_v15  ;;  %v549_v29 = vld [vmem:[%s993_s3] ss:$0 sm:$0xff]  ;;  %v171_v34 = vld [vmem:[#allocation4 + $0xc0] sm:$0xff]  ;;  %v169_v36 = vld [vmem:[#allocation4 + $0xb0] sm:$0xff] }
  0x1b   :  { %636 = vmatprep.subr.mxu0 %v839_v2  ;;  %667 = vmatprep.subr.mxu1 %v839_v2  ;;  %v170_v35 = vld [vmem:[#allocation4 + $0xb8] sm:$0xff]  ;;  %v168_v37 = vld [vmem:[#allocation4 + $0xa8] sm:$0xff]  ;;  %v167_v38 = vld [vmem:[#allocation4 + $0xa0] sm:$0xff] }
  0x1c   :  { %637 = vmatpush3.msra.mxu0 %v78_v9  ;;  %668 = vmatpush3.msra.mxu1 %v176_v17  ;;  %v166_v39 = vld [vmem:[#allocation4 + $0x98] sm:$0xff]  ;;  %v165_v40 = vld [vmem:[#allocation4 + $0x90] sm:$0xff]  ;;  %v164_v41 = vld [vmem:[#allocation4 + $0x88] sm:$0xff] }
  0x1d   :  { %638 = vmatprep.subr.mxu0 %v839_v2  ;;  %669 = vmatprep.subr.mxu1 %v839_v2  ;;  %v163_v42 = vld [vmem:[#allocation4 + $0x80] sm:$0xff]  ;;  %v274_v43 = vld [vmem:[#allocation4 + $0x178] sm:$0xff]  ;;  %v273_v44 = vld [vmem:[#allocation4 + $0x170] sm:$0xff] }
  0x1e   :  { %639 = vmatpush3.msra.mxu0 %v77_v10  ;;  %670 = vmatpush3.msra.mxu1 %v175_v19  ;;  %v272_v45 = vld [vmem:[#allocation4 + $0x168] sm:$0xff]  ;;  %v271_v46 = vld [vmem:[#allocation4 + $0x160] sm:$0xff]  ;;  %v270_v47 = vld [vmem:[#allocation4 + $0x158] sm:$0xff] }
  0x1f   :  { %640 = vmatprep.subr.mxu0 %v839_v2  ;;  %671 = vmatprep.subr.mxu1 %v839_v2  ;;  %v269_v48 = vld [vmem:[#allocation4 + $0x150] sm:$0xff]  ;;  %v268_v49 = vld [vmem:[#allocation4 + $0x148] sm:$0xff]  ;;  %v551_v50 = vld [vmem:[%s993_s3 + $0x1] ss:$0 sm:$0xff] }
  0x20   :  { %641 = vmatpush3.msra.mxu0 %v76_v11  ;;  %672 = vmatpush3.msra.mxu1 %v174_v21  ;;  %v267_v55 = vld [vmem:[#allocation4 + $0x140] sm:$0xff]  ;;  %v266_v56 = vld [vmem:[#allocation4 + $0x138] sm:$0xff]  ;;  %v265_v57 = vld [vmem:[#allocation4 + $0x130] sm:$0xff] }
  0x21   :  { %642 = vmatprep.subr.mxu0 %v839_v2  ;;  %673 = vmatprep.subr.mxu1 %v839_v2  ;;  %v264_v58 = vld [vmem:[#allocation4 + $0x128] sm:$0xff]  ;;  %v263_v59 = vld [vmem:[#allocation4 + $0x120] sm:$0xff]  ;;  %v262_v60 = vld [vmem:[#allocation4 + $0x118] sm:$0xff] }
  0x22   :  { %643 = vmatpush3.msra.mxu0 %v75_v12  ;;  %674 = vmatpush3.msra.mxu1 %v173_v23  ;;  %v261_v61 = vld [vmem:[#allocation4 + $0x110] sm:$0xff]  ;;  %v260_v62 = vld [vmem:[#allocation4 + $0x108] sm:$0xff]  ;;  %v259_v63 = vld [vmem:[#allocation4 + $0x100] sm:$0xff] }
  0x23   :  { %644 = vmatprep.subr.mxu0 %v839_v2  ;;  %675 = vmatprep.subr.mxu1 %v839_v2  ;;  %v370_v0 = vld [vmem:[#allocation4 + $0x1f8] sm:$0xff]  ;;  %v369_v1 = vld [vmem:[#allocation4 + $0x1f0] sm:$0xff]  ;;  %v368_v3 = vld [vmem:[#allocation4 + $0x1e8] sm:$0xff] }
  0x24   :  { %645 = vmatpush3.msra.mxu0 %v74_v13  ;;  %676 = vmatpush3.msra.mxu1 %v172_v25  ;;  %v367_v4 = vld [vmem:[#allocation4 + $0x1e0] sm:$0xff]  ;;  %v366_v5 = vld [vmem:[#allocation4 + $0x1d8] sm:$0xff]  ;;  %v365_v6 = vld [vmem:[#allocation4 + $0x1d0] sm:$0xff] }
  0x25   :  { %646 = vmatprep.subr.mxu0 %v839_v2  ;;  %677 = vmatprep.subr.mxu1 %v839_v2  ;;  %v364_v7 = vld [vmem:[#allocation4 + $0x1c8] sm:$0xff]  ;;  %v553_v8 = vld [vmem:[%s993_s3 + $0x2] ss:$0 sm:$0xff]  ;;  %v362_v14 = vld [vmem:[#allocation4 + $0x1b8] sm:$0xff] }
  0x26   :  { %647 = vmatpush3.msra.mxu0 %v73_v16  ;;  %678 = vmatpush3.msra.mxu1 %v171_v34  ;;  %v363_v13 = vld [vmem:[#allocation4 + $0x1c0] sm:$0xff]  ;;  %v361_v15 = vld [vmem:[#allocation4 + $0x1b0] sm:$0xff]  ;;  %v360_v16 = vld [vmem:[#allocation4 + $0x1a8] sm:$0xff] }
  0x27   :  { %648 = vmatprep.subr.mxu0 %v839_v2  ;;  %679 = vmatprep.subr.mxu1 %v839_v2  ;;  %v359_v17 = vld [vmem:[#allocation4 + $0x1a0] sm:$0xff]  ;;  %v357_v19 = vld [vmem:[#allocation4 + $0x190] sm:$0xff] }
  0x28   :  { %649 = vmatpush3.msra.mxu0 %v72_v18  ;;  %680 = vmatpush3.msra.mxu1 %v170_v35  ;;  %v358_v18 = vld [vmem:[#allocation4 + $0x198] sm:$0xff]  ;;  %v355_v21 = vld [vmem:[#allocation4 + $0x180] sm:$0xff] }
  0x29   :  { %650 = vmatprep.subr.mxu0 %v839_v2  ;;  %681 = vmatprep.subr.mxu1 %v839_v2 }
  0x2a   :  { %651 = vmatpush3.msra.mxu0 %v71_v20  ;;  %682 = vmatpush3.msra.mxu1 %v169_v36  ;;  %v356_v20 = vld [vmem:[#allocation4 + $0x188] sm:$0xff] }
  0x2b   :  { %652 = vmatprep.subr.mxu0 %v839_v2  ;;  %683 = vmatprep.subr.mxu1 %v839_v2 }
  0x2c   :  { %653 = vmatpush3.msra.mxu0 %v70_v22  ;;  %684 = vmatpush3.msra.mxu1 %v168_v37  ;;  %v555_v22 = vld [vmem:[%s993_s3 + $0x3] ss:$0 sm:$0xff] }
  0x2d   :  { %654 = vmatprep.subr.mxu0 %v839_v2  ;;  %685 = vmatprep.subr.mxu1 %v839_v2 }
  0x2e   :  { %655 = vmatpush3.msra.mxu0 %v69_v24  ;;  %686 = vmatpush3.msra.mxu1 %v167_v38 }
  0x2f   :  { %656 = vmatprep.subr.mxu0 %v839_v2  ;;  %687 = vmatprep.subr.mxu1 %v839_v2 }
  0x30   :  { %657 = vmatpush3.msra.mxu0 %v68_v26  ;;  %688 = vmatpush3.msra.mxu1 %v166_v39 }
  0x31   :  { %658 = vmatprep.subr.mxu0 %v839_v2  ;;  %689 = vmatprep.subr.mxu1 %v839_v2 }
  0x32   :  { %659 = vmatpush3.msra.mxu0 %v67_v27  ;;  %690 = vmatpush3.msra.mxu1 %v165_v40  ;;  %v557_v27 = vld [vmem:[%s993_s3 + $0x4] ss:$0 sm:$0xff]  ;;  %s811_s3 = scalar_lea.vmem %s540_s22, 16 }
  0x33   :  { %698 = vmatprep.subr.mxu0 %v839_v2  ;;  %691 = vmatprep.subr.mxu1 %v839_v2  ;;  %p812_p5 = scmp.ne.s32.totalorder %s540_s22, %s811_s3  ;;  %p817_p7 = scmp.lt.s32.totalorder %s815_s0, %s811_s3 }
  0x34   :  { %692 = vmatpush3.msra.mxu1 %v164_v41 }
  0x35   :  { %693 = vmatprep.subr.mxu1 %v839_v2  ;;  %p818_p8 = por %p817_p7, %p816_p6 }
  0x36   :  { %694 = vmatpush3.msra.mxu1 %v163_v42 }
  0x37   :  { %733 = vmatprep.subr.mxu1 %v839_v2  ;;  %p819_p9 = pnand %p818_p8, %p812_p5 }
  0x8e   :  { %v49_v30 = vpop.permute.xlu0 %48 }
  0x8f   :  { %v57_v31 = vmul.f32 %v548_v28, %v49_v30 }
  0x91   :  { %v65_v32 = vadd.f32 %v549_v29, %v57_v31  ;;  %v450_v31 = vld [vmem:[%s995_s5] sm:$0x1] }
  0x92   :  { %v455_v35 = vpop.permute.xlu0 %454 }
  0x93   :  { %781 = vtanh.f32 %v65_v32  ;;  %v457_v32 = vlaneseq }
  0xa0   :  { %v782_v33 = vpop.eup %781 }
  0xa1   :  { %661 = vmatmul.mubr.f32.vlgmr.msra.gmra.mxu0 %v782_v33  ;;  %v458_v33 = vshrl.u32 %v457_v32, 7 }
  0xa2   :  { %730 = vmatprep.mubr.msk.f32.mxu0 %vm840_vm0, %v839_v2  ;;  %699 = vmatpush3.msra.mxu0 %v274_v43 }
  0xa3   :  { %700 = vmatprep.subr.mxu0 %v839_v2  ;;  %v459_v34 = vsub.s32 0, %v458_v33 }
  0xa4   :  { %701 = vmatpush3.msra.mxu0 %v273_v44 }
  0xa5   :  { %702 = vmatprep.subr.mxu0 %v839_v2  ;;  %v460_v36 = vrot.slane %v455_v35, %v459_v34 }
  0xa6   :  { %703 = vmatpush3.msra.mxu0 %v272_v45 }
  0xa7   :  { %704 = vmatprep.subr.mxu0 %v839_v2 }
  0xa8   :  { %705 = vmatpush3.msra.mxu0 %v271_v46 }
  0xa9   :  { %706 = vmatprep.subr.mxu0 %v839_v2 }
  0xaa   :  { %707 = vmatpush3.msra.mxu0 %v270_v47 }
  0xab   :  { %708 = vmatprep.subr.mxu0 %v839_v2 }
  0xac   :  { %709 = vmatpush3.msra.mxu0 %v269_v48 }
  0xad   :  { %710 = vmatprep.subr.mxu0 %v839_v2 }
  0xae   :  { %711 = vmatpush3.msra.mxu0 %v268_v49 }
  0xaf   :  { %712 = vmatprep.subr.mxu0 %v839_v2 }
  0xb0   :  { %713 = vmatpush3.msra.mxu0 %v267_v55 }
  0xb1   :  { %714 = vmatprep.subr.mxu0 %v839_v2 }
  0xb2   :  { %715 = vmatpush3.msra.mxu0 %v266_v56 }
  0xb3   :  { %716 = vmatprep.subr.mxu0 %v839_v2 }
  0xb4   :  { %717 = vmatpush3.msra.mxu0 %v265_v57 }
  0xb5   :  { %718 = vmatprep.subr.mxu0 %v839_v2 }
  0xb6   :  { %719 = vmatpush3.msra.mxu0 %v264_v58 }
  0xb7   :  { %720 = vmatprep.subr.mxu0 %v839_v2 }
  0xb8   :  { %721 = vmatpush3.msra.mxu0 %v263_v59 }
  0xb9   :  { %722 = vmatprep.subr.mxu0 %v839_v2 }
  0xba   :  { %723 = vmatpush3.msra.mxu0 %v262_v60 }
  0xbb   :  { %724 = vmatprep.subr.mxu0 %v839_v2 }
  0xbc   :  { %725 = vmatpush3.msra.mxu0 %v261_v61 }
  0xbd   :  { %726 = vmatprep.subr.mxu0 %v839_v2 }
  0xbe   :  { %727 = vmatpush3.msra.mxu0 %v260_v62 }
  0xbf   :  { %728 = vmatprep.subr.mxu0 %v839_v2 }
  0xc0   :  { %729 = vmatpush3.msra.mxu0 %v259_v63 }
  0xc1   :  { %768 = vmatprep.subr.mxu0 %v839_v2 }
 0x161   :  { %v157_v51 = vpop.f32.mrf.mxu0 }
 0x162   :  { %v158_v52 = vadd.f32 %v551_v50, %v157_v51 }
 0x163   :  { %v662_v53 = vpop.f32.mrf.mxu0 }
 0x164   :  { %783 = vtanh.f32 %v158_v52 }
 0x171   :  { %v784_v54 = vpop.eup %783 }
 0x172   :  { %696 = vmatmul.mubr.f32.vlgmr.msra.gmra.mxu1 %v784_v54 }
 0x173   :  { %765 = vmatprep.mubr.msk.f32.mxu1 %vm840_vm0, %v839_v2  ;;  %734 = vmatpush3.msra.mxu1 %v370_v0 }
 0x174   :  { %735 = vmatprep.subr.mxu1 %v839_v2 }
 0x175   :  { %736 = vmatpush3.msra.mxu1 %v369_v1 }
 0x176   :  { %737 = vmatprep.subr.mxu1 %v839_v2 }
 0x177   :  { %738 = vmatpush3.msra.mxu1 %v368_v3 }
 0x178   :  { %739 = vmatprep.subr.mxu1 %v839_v2 }
 0x179   :  { %740 = vmatpush3.msra.mxu1 %v367_v4 }
 0x17a   :  { %741 = vmatprep.subr.mxu1 %v839_v2 }
 0x17b   :  { %742 = vmatpush3.msra.mxu1 %v366_v5 }
 0x17c   :  { %743 = vmatprep.subr.mxu1 %v839_v2 }
 0x17d   :  { %744 = vmatpush3.msra.mxu1 %v365_v6 }
 0x17e   :  { %745 = vmatprep.subr.mxu1 %v839_v2 }
 0x17f   :  { %746 = vmatpush3.msra.mxu1 %v364_v7 }
 0x180   :  { %747 = vmatprep.subr.mxu1 %v839_v2 }
 0x181   :  { %748 = vmatpush3.msra.mxu1 %v363_v13 }
 0x182   :  { %749 = vmatprep.subr.mxu1 %v839_v2 }
 0x183   :  { %750 = vmatpush3.msra.mxu1 %v362_v14 }
 0x184   :  { %751 = vmatprep.subr.mxu1 %v839_v2 }
 0x185   :  { %752 = vmatpush3.msra.mxu1 %v361_v15 }
 0x186   :  { %753 = vmatprep.subr.mxu1 %v839_v2 }
 0x187   :  { %754 = vmatpush3.msra.mxu1 %v360_v16 }
 0x188   :  { %755 = vmatprep.subr.mxu1 %v839_v2 }
 0x189   :  { %756 = vmatpush3.msra.mxu1 %v359_v17 }
 0x18a   :  { %757 = vmatprep.subr.mxu1 %v839_v2 }
 0x18b   :  { %758 = vmatpush3.msra.mxu1 %v358_v18 }
 0x18c   :  { %759 = vmatprep.subr.mxu1 %v839_v2 }
 0x18d   :  { %760 = vmatpush3.msra.mxu1 %v357_v19 }
 0x18e   :  { %761 = vmatprep.subr.mxu1 %v839_v2 }
 0x18f   :  { %762 = vmatpush3.msra.mxu1 %v356_v20 }
 0x190   :  { %763 = vmatprep.subr.mxu1 %v839_v2 }
 0x191   :  { %764 = vmatpush3.msra.mxu1 %v355_v21 }
 0x232   :  { %v253_v9 = vpop.f32.mrf.mxu1 }
 0x233   :  { %v254_v10 = vadd.f32 %v553_v8, %v253_v9 }
 0x234   :  { %v697_v11 = vpop.f32.mrf.mxu1 }
 0x235   :  { %785 = vtanh.f32 %v254_v10 }
 0x242   :  { %v786_v12 = vpop.eup %785 }
 0x243   :  { %731 = vmatmul.mubr.f32.vlgmr.msra.gmra.mxu0 %v786_v12 }
 0x244   :  { %770 = vmatprep.mubr.msk.f32.mxu0 %vm840_vm0, %v839_v2 }
 0x303   :  { %v349_v23 = vpop.f32.mrf.mxu0 }
 0x304   :  { %v350_v24 = vadd.f32 %v555_v22, %v349_v23 }
 0x305   :  { %v732_v25 = vpop.f32.mrf.mxu0 }
 0x306   :  { %787 = vtanh.f32 %v350_v24 }
 0x313   :  { %v788_v26 = vpop.eup %787 }
 0x314   :  { %766 = vmatmul.mubr.f32.vlgmr.msra.gmra.mxu1 %v788_v26 }
 0x3d4   :  { %v445_v28 = vpop.f32.mrf.mxu1 }
 0x3d5   :  { %v446_v29 = vadd.f32 %v557_v27, %v445_v28 }
 0x3d6   :  { %v767_v30 = vpop.f32.mrf.mxu1 }
 0x3d7   :  { %789 = vtanh.f32 %v446_v29 }
 0x3e4   :  { %v790_v2 = vpop.eup %789 }
 0x3e5   :  { %769 = vmatpush3.xpose.msra.mxu0 %v790_v2 }
 0x3e8   :  { %771 = vmatmul.mubr.f32.vlgmr.msra.gmra.mxu0 %v450_v31 }
 0x4a8   :  { %v527_v37 = vpop.f32.mrf.mxu0 }
 0x4a9   :  { %v528_v38 = vadd.f32 %v527_v37, %v460_v36 }
 0x4aa   :  { %v772_v39 = vpop.f32.mrf.mxu0 }
 0x4ab   :  { %532 = vst.msk [vmem:[#allocation7] sm:$0x1] %vm531_vm1, %v528_v38 }
 0x4ac   :  { %822 = shalt.err (!%p819_p9)
}
 0x4ad   :  { %542 = dma.vmem_to_hbm [thread:$0]  %s540_s22, 16, %s997_s7, [#allocation6]  }
 0x4ae   :  { %833 = dma.done.wait [#allocation6], 16  }
 0x4af   :  { %834 = vsyncadd [#allocation6], 4294967280 }
 0x4b0   :  { %546 = vsyncpa [#allocation5], 1 }
 0x4b1   :  { %547 = vsyncpa [#allocation6], 1 }

</bundles_post_ra>
